<compile_context>
chip_gen: v6e
topology: v6e:2x2x1
jax: 0.10.0
libtpu: 0.0.40
codegen_flags: <defaults>
</compile_context>

<pallas_src>
import jax
import jax.numpy as jnp
from jax.experimental import pallas as pl
from jax.experimental.pallas import tpu as pltpu


def positional_embedding_kernel(table_ref, out_ref):
    # table_ref: (1, seq_len*hidden) whole-array VMEM operand (copied in once).
    # out_ref:   (TB, seq_len*hidden) output block covering TB batch elements.
    # One sublane broadcast + one full, unmasked store per grid step.
    out_ref[...] = jnp.broadcast_to(table_ref[...], out_ref.shape)


def _vmem_capacity_bytes():
    """Physical VMEM of the current TPU generation (fallback: v7x's 64 MiB)."""
    try:
        info = pltpu.get_tpu_info()
        cap = getattr(info, "vmem_capacity_bytes", None)
        if cap:
            return int(cap)
    except Exception:
        pass
    return 64 * 1024 * 1024  # conservative: smallest per-TC VMEM (v7x)


def _pick_batch_tile(batch, max_tb):
    """Largest divisor of `batch` that is <= max_tb, preferring sublane-friendly
    tiles (== batch or a multiple of 8) so the output block obeys the (8, 128)
    tiling rule without padding/masking."""
    max_tb = max(1, min(batch, max_tb))
    divisors = [d for d in range(1, max_tb + 1) if batch % d == 0]
    aligned = [d for d in divisors if d == batch or d % 8 == 0]
    return max(aligned) if aligned else max(divisors)


def positional_embedding(sequence, table):
    """sequence: int32[batch, seq_len] (only the shape is used, as in PyTorch).
    table:    float32[max_len, hidden] positional-embedding weights.
    returns:  float32[batch, seq_len, hidden] with out[b, s, :] == table[s, :]."""
    batch, seq_len = sequence.shape
    max_len, hidden = table.shape
    assert seq_len <= max_len

    lh = seq_len * hidden
    row_bytes = lh * table.dtype.itemsize

    # Generation-aware sizing: spend at most ~40% of physical VMEM on the
    # double-buffered output block; leave headroom for the table + scratch.
    vmem_capacity = _vmem_capacity_bytes()
    out_budget = (2 * vmem_capacity) // 5
    tb = _pick_batch_tile(batch, out_budget // max(1, 2 * row_bytes))

    vmem_needed = 2 * tb * row_bytes + row_bytes        # out double-buffer + table
    vmem_limit = min(vmem_capacity, max(vmem_needed + (8 << 20), 32 << 20))

    # Lane-dense layout: flatten the first seq_len table rows into a single
    # (1, seq_len*hidden) row outside the kernel (tiny one-time XLA reshape);
    # the (batch, seq_len*hidden) output is reshaped back for free (contiguous).
    table_row = table[:seq_len].reshape(1, lh)

    out_flat = pl.pallas_call(
        positional_embedding_kernel,
        out_shape=jax.ShapeDtypeStruct((batch, lh), table.dtype),
        grid_spec=pltpu.PrefetchScalarGridSpec(
            num_scalar_prefetch=0,
            grid=(batch // tb,),
            # Whole table row as a plain VMEM operand: grid-invariant, single
            # HBM->VMEM copy, no per-step pipelining / double buffering.
            in_specs=[pl.BlockSpec(memory_space=pltpu.MemorySpace.VMEM)],
            # TB batch rows per grid step -> large, unmasked output DMAs.
            out_specs=pl.BlockSpec((tb, lh), lambda b: (b, 0)),
        ),
        compiler_params=pltpu.CompilerParams(
            dimension_semantics=("parallel",),   # megacore-split batch tiles (v7x)
            vmem_limit_bytes=int(vmem_limit),
        ),
    )(table_row)

    return out_flat.reshape(batch, seq_len, hidden)


if __name__ == "__main__":
    # Module hyper-params (small, consistent with the forward pass).
    max_len = 16
    hidden_size = 32
    batch_size = 2
    seq_len = 8

    key = jax.random.PRNGKey(0)
    k_table, k_seq = jax.random.split(key)

    # Deterministic parameter init: nn.Embedding default is N(0, 1).
    table = jax.random.normal(k_table, (max_len, hidden_size), dtype=jnp.float32)
    # Token ids (values are irrelevant to the forward pass, only the shape).
    sequence = jax.random.randint(k_seq, (batch_size, seq_len), 0, 100, dtype=jnp.int32)

    out = positional_embedding(sequence, table)
    out = jax.block_until_ready(out)

    # Reference: out[b, s, :] == table[s, :]
    ref = jnp.broadcast_to(table[:seq_len][None, :, :],
                           (batch_size, seq_len, hidden_size))
    assert out.shape == (batch_size, seq_len, hidden_size)
    assert out.dtype == jnp.float32
    assert jnp.array_equal(out, ref)

    print("KERNEL_OK")
</pallas_src>

<mosaic_0001>
module attributes {stable_mosaic.version = 11 : i64} {
  func.func @positional_embedding_kernel(%arg0: i32, %arg1: memref<1x256xf32, #tpu.memory_space<vmem>>, %arg2: memref<2x256xf32, #tpu.memory_space<vmem>>) attributes {dimension_semantics = [#tpu.dimension_semantics<parallel>], iteration_bounds = array<i64: 1>, scalar_prefetch = 0 : i64, scratch_operands = 0 : i64, tpu.core_type = #tpu.core_type<tc>, window_params = [{pipeline_mode = #tpu.pipeline_mode<synchronous>, transform_indices = @transform_0, window_bounds = array<i64: 1, 256>}, {transform_indices = @transform_1, window_bounds = array<i64: 2, 256>}]} {
    %c0 = arith.constant 0 : index
    %c0_0 = arith.constant 0 : index
    %0 = vector.load %arg1[%c0, %c0_0] : memref<1x256xf32, #tpu.memory_space<vmem>>, vector<1x256xf32>
    %1 = vector.shape_cast %0 : vector<1x256xf32> to vector<1x256xf32>
    %2 = vector.broadcast %1 : vector<1x256xf32> to vector<2x256xf32>
    %c0_1 = arith.constant 0 : index
    %c0_2 = arith.constant 0 : index
    %3 = vector.load %arg2[%c0_1, %c0_2] : memref<2x256xf32, #tpu.memory_space<vmem>>, vector<2x256xf32>
    tpu.vector_store %arg2[%c0_1, %c0_2], %2 {strides = array<i32>} : memref<2x256xf32, #tpu.memory_space<vmem>>, vector<2x256xf32>,
    return
  }
  func.func @transform_0(%arg0: i32) -> (i32, i32) {
    %c0_i32 = arith.constant 0 : i32
    %c0_i32_0 = arith.constant 0 : i32
    %c0_i32_1 = arith.constant 0 : i32
    return %c0_i32, %c0_i32_0 : i32, i32
  }
  func.func @transform_1(%arg0: i32) -> (i32, i32) {
    %c0_i32 = arith.constant 0 : i32
    %c0_i32_0 = arith.constant 0 : i32
    return %arg0, %c0_i32 : i32, i32
  }
}

</mosaic_0001>

<bundles_post_ra>
// kernel: tpu_custom_call.1
= control target key start
LH: loop header
LB: loop body
LE: loop exit
PB: predicated region body
PF: predicated region fallthrough
CT: control target
= control target key end

     0   :  { %6 = vsyncpa [#allocation3], 0  ;;  %s121_s0 = inlined_call_operand.hbm [shape: f32[1,256], index: 0, kind: input, shape index: {}]   ;;  %s122_s1 = inlined_call_operand.hbm [shape: f32[2,256], index: 1, kind: output, shape index: {}]  }
   0x1   :  { %7 = vsyncpa [#allocation4], 0  ;;  %s103_s6 = smov [#allocation2]  }
   0x2   :  { %s14_s7 = sshll.u32 %s103_s6, 4  ;;  %s15_s7 = int_to_ptr.vmem [resolvable:$true] %s14_s7 }
   0x3   :  { %s67_s8 = scalar_lea.vmem %s15_s7, 32  ;;  %p72_p1 = scmp.lt.s32.totalorder %s15_s7, %s15_s7 }
   0x4   :  { %p68_p0 = scmp.ne.s32.totalorder %s15_s7, %s67_s8  ;;  %p73_p2 = scmp.lt.s32.totalorder %s67_s8, %s67_s8 }
   0x6   :  { %p74_p3 = por %p73_p2, %p72_p1 }
   0x8   :  { %p75_p4 = pnand %p74_p3, %p68_p0 }
   0xa   :  { %78 = shalt.err (!%p75_p4)
}
   0xb   :  { %17 = dma.hbm_to_vmem [thread:$0]  %s121_s0, 32, %s15_s7, [#allocation3]  }
   0xc   :  { %99 = dma.done.wait [#allocation3], 32  }
   0xd   :  { %100 = vsyncadd [#allocation3], 4294967264  ;;  %v23_v0 = vlaneseq  ;;  %v21_v4 = vld [vmem:[#allocation2] sm:$0x3]  ;;  %s104_s11 = smov [#allocation5]  }
   0xe   :  { %s47_s12 = sshll.u32 %s104_s11, 4  ;;  %s48_s12 = int_to_ptr.vmem [resolvable:$true] %s47_s12 }
   0xf   :  { %v24_v1 = vshrl.u32 %v23_v0, 7  ;;  %s79_s13 = scalar_lea.vmem %s48_s12, 64  ;;  %p84_p6 = scmp.lt.s32.totalorder %s48_s12, %s48_s12 }
  0x10   :  { %p80_p5 = scmp.ne.s32.totalorder %s48_s12, %s79_s13  ;;  %p85_p7 = scmp.lt.s32.totalorder %s79_s13, %s79_s13 }
  0x11   :  { %v25_v2 = vsub.s32 0, %v24_v1  ;;  %v29_v3 = vsub.s32 1, %v24_v1 }
  0x12   :  { %p86_p8 = por %p85_p7, %p84_p6 }
  0x13   :  { %v26_v5 = vrot.slane %v21_v4, %v25_v2  ;;  %v30_v6 = vrot.slane %v21_v4, %v29_v3 }
  0x14   :  { %p87_p9 = pnand %p86_p8, %p80_p5 }
  0x15   :  { %v31_v7 = vcombine.low %v26_v5, %v30_v6 }
  0x17   :  { %56 = vst.sshfl [vmem:[#allocation5] sm:$0x33 pattern:$0x76325410] %v31_v7 }
  0x18   :  { %90 = shalt.err (!%p87_p9)
}
  0x19   :  { %50 = dma.vmem_to_hbm [thread:$0]  %s48_s12, 64, %s122_s1, [#allocation4]  }
  0x1a   :  { %101 = dma.done.wait [#allocation4], 64  }
  0x1b   :  { %102 = vsyncadd [#allocation4], 4294967232 }
  0x1c   :  { %54 = vsyncpa [#allocation3], 1 }
  0x1d   :  { %55 = vsyncpa [#allocation4], 1 }

</bundles_post_ra>
